<compile_context>
chip_gen: v7x
topology: tpu7x:2x2x1
jax: 0.10.0
libtpu: 0.0.40
codegen_flags: <defaults>
</compile_context>

<pallas_src>
import jax
import jax.numpy as jnp
from jax import lax
from jax.experimental import pallas as pl
from jax.experimental.pallas import tpu as pltpu

_MIB = 1024 * 1024


def _round_up(x, m):
    return ((x + m - 1) // m) * m


def _sublane_multiple(dtype):
    # dtype-native sublane packing: 8 rows for 4-byte, 16 for 2-byte, 32 for 1-byte elems.
    return {4: 8, 2: 16, 1: 32}.get(jnp.dtype(dtype).itemsize, 8)


def _chip_params():
    """Generation-aware knobs; robust fallbacks if the device kind is unknown."""
    kind = ""
    try:
        kind = jax.devices()[0].device_kind.lower().replace(" ", "")
    except Exception:
        pass
    is_v7x = ("7x" in kind) or ("v7" in kind)
    megacore = is_v7x or ("v4" in kind) or ("v5p" in kind)
    # v7x has 64 MiB physical VMEM -> keep the scoped limit <= ~48 MiB;
    # v5e/v6e have 128 MiB -> allow large double-buffered strips (v5e default is only 16 MiB).
    vmem_cap = 48 * _MIB if is_v7x else 100 * _MIB
    n_cores = 2 if megacore else 1
    in_bufs = 3 if is_v7x else 2  # deeper input pipelining on v7x (3.2 TB/s HBM, short steps)
    return vmem_cap, n_cores, in_bufs


def _make_kernel(tk, rem_k):
    def kernel(x_ref, w_ref, b_ref, o_ref, acc_ref):
        # x_ref:   [tm, tk]  VMEM (slice of x [B, I])
        # w_ref:   [tn, tk]  VMEM (slice of W in PyTorch [O, I] layout -- no transpose)
        # b_ref:   [1,  tn]  VMEM
        # o_ref:   [tm, tn]  VMEM
        # acc_ref: [tm, tn]  VMEM scratch, f32, resident across the K grid axis
        k = pl.program_id(2)

        @pl.when(k == 0)
        def _():
            acc_ref[...] = jnp.zeros_like(acc_ref)

        x_val = x_ref[...]
        w_val = w_ref[...]
        if rem_k:
            # K does not divide evenly: zero the garbage tail of the (partial) K block.
            # Both operands must be masked -- stale NaN/Inf * 0 would still poison the sum.
            valid = jnp.where(k == pl.num_programs(2) - 1, rem_k, tk)
            x_val = jnp.where(
                lax.broadcasted_iota(jnp.int32, x_val.shape, 1) < valid, x_val, 0)
            w_val = jnp.where(
                lax.broadcasted_iota(jnp.int32, w_val.shape, 1) < valid, w_val, 0)

        # x[tm, tk] . W[tn, tk]^T -> [tm, tn], accumulated in f32. Contracting the last
        # dim of both operands is MXU-native (no per-step XLU transpose of the W tile).
        acc_ref[...] += lax.dot_general(
            x_val, w_val,
            dimension_numbers=(((1,), (1,)), ((), ())),
            preferred_element_type=jnp.float32,
        )

        @pl.when(k == pl.num_programs(2) - 1)
        def _():
            o_ref[...] = (acc_ref[...] + b_ref[...].astype(jnp.float32)).astype(o_ref.dtype)

    return kernel


def linear_forward(x, W, b, *, tm=None, tn=None, tk=None):
    """y = x @ W^T + b  (matches LinearFunction.forward semantics).

    x: [batch_size, input_size]
    W: [output_size, input_size]   (PyTorch convention, used as-is)
    b: [output_size]
    returns y: [batch_size, output_size]
    """
    B, I = x.shape
    O, I2 = W.shape
    assert I == I2 and b.shape == (O,)

    vmem_cap, n_cores, in_bufs = _chip_params()
    sub = _sublane_multiple(x.dtype)
    align_n = 256  # full 256x256 MXU passes on v6e/v7x; also 128-aligned for v5e's 128x128 MXU

    # --- tile selection ----------------------------------------------------------------
    tm = min(tm if tm is not None else 512, _round_up(B, sub))
    tm = _round_up(tm, sub)
    tn = min(tn if tn is not None else 512, _round_up(O, align_n))
    tn = _round_up(tn, 128)
    if tk is None:
        # Single K step whenever the whole reduction strip fits comfortably in VMEM;
        # otherwise large 1024-wide K tiles to amortize accumulator RMW + per-step overhead.
        tk = I if I <= 2048 else 1024
    else:
        tk = min(tk, I)
        if tk < I:
            tk = max(128, _round_up(tk, 128))

    # v7x has 2 TensorCores: guarantee >= 2 independent (i, j) output tiles so the
    # "parallel" grid axes actually shard work (split N first; M for tiny-O cases).
    if n_cores >= 2 and pl.cdiv(B, tm) * pl.cdiv(O, tn) < 2:
        if O > align_n:
            tn = _round_up(pl.cdiv(O, 2), align_n)
        elif B > sub:
            tm = _round_up(pl.cdiv(B, 2), sub)

    # --- VMEM budgeting from the true per-step footprint --------------------------------
    xsz = jnp.dtype(x.dtype).itemsize
    wsz = jnp.dtype(W.dtype).itemsize
    bsz = jnp.dtype(b.dtype).itemsize
    osz = xsz  # output dtype = x.dtype

    def footprint(tm_, tn_, tk_):
        return (in_bufs * (tm_ * tk_ * xsz + tn_ * tk_ * wsz + tn_ * bsz)
                + 2 * tm_ * tn_ * osz + tm_ * tn_ * 4)

    # Shrink tk -> tn -> tm if a requested tiling would not fit the per-generation cap.
    while footprint(tm, tn, tk) * 3 // 2 > vmem_cap:
        if tk > 128:
            tk = max(128, _round_up(pl.cdiv(tk, 2), 128))
        elif tn > 128:
            tn = max(128, _round_up(pl.cdiv(tn, 2), 128))
        elif tm > sub:
            tm = max(sub, _round_up(pl.cdiv(tm, 2), sub))
        else:
            break

    grid = (pl.cdiv(B, tm), pl.cdiv(O, tn), pl.cdiv(I, tk))
    rem_k = I % tk  # 0 iff tk divides I (includes the tk == I single-step case)
    vmem_limit = int(max(16 * _MIB, min(footprint(tm, tn, tk) * 3 // 2 + 4 * _MIB, vmem_cap)))

    # Optional 3-deep input buffering on v7x (only when there are enough grid steps).
    use_deep = in_bufs > 2 and (grid[0] * grid[1] * grid[2]) > 2

    def in_spec(shape, index_map, deep_ok):
        if deep_ok and use_deep:
            try:
                return pl.BlockSpec(shape, index_map, pipeline_mode=pl.Buffered(in_bufs))
            except TypeError:
                pass  # older API without pipeline_mode -> default double-buffering
        return pl.BlockSpec(shape, index_map)

    cost = pl.CostEstimate(
        flops=2 * B * I * O,
        transcendentals=0,
        bytes_accessed=B * I * xsz + O * I * wsz + O * bsz + B * O * osz,
    )

    out = pl.pallas_call(
        _make_kernel(tk, rem_k),
        out_shape=jax.ShapeDtypeStruct((B, O), x.dtype),
        grid_spec=pltpu.PrefetchScalarGridSpec(
            num_scalar_prefetch=0,
            grid=grid,
            in_specs=[
                in_spec((tm, tk), lambda i, j, k: (i, k), True),   # x tile
                in_spec((tn, tk), lambda i, j, k: (j, k), True),   # W tile ([O, I] layout)
                in_spec((1, tn), lambda i, j, k: (0, j), False),   # bias tile
            ],
            out_specs=pl.BlockSpec((tm, tn), lambda i, j, k: (i, j)),
            scratch_shapes=[pltpu.VMEM((tm, tn), jnp.float32)],
        ),
        compiler_params=pltpu.CompilerParams(
            dimension_semantics=("parallel", "parallel", "arbitrary"),
            vmem_limit_bytes=vmem_limit,
        ),
        cost_estimate=cost,
    )(x, W, b.reshape(1, O))

    return out


# TODO(synk): LinearFunction.backward (grad_input / grad_W / grad_b) is not implemented;
# only the forward pass is required here.

if __name__ == "__main__":
    key = jax.random.PRNGKey(0)
    kx, kw, kx2, kw2, kb2 = jax.random.split(key, 5)

    # --- primary check: shapes consistent with the module (batch=8, in=32, out=16) ---
    batch_size, input_size, output_size = 8, 32, 16
    # Deterministic parameter init mirroring Linear.__init__:
    #   W ~ randn(output_size, input_size), b = zeros(output_size)
    W = jax.random.normal(kw, (output_size, input_size), dtype=jnp.float32)
    b = jnp.zeros((output_size,), dtype=jnp.float32)
    x = jax.random.normal(kx, (batch_size, input_size), dtype=jnp.float32)

    y = jax.block_until_ready(linear_forward(x, W, b))
    y_ref = x @ W.T + b
    assert y.shape == (batch_size, output_size)
    assert jnp.allclose(y, y_ref, atol=1e-4, rtol=1e-4)

    # --- secondary check: ragged M/N partial blocks + multi-step K with in-kernel tail mask ---
    B2, I2, O2 = 40, 200, 300
    x2 = jax.random.normal(kx2, (B2, I2), dtype=jnp.float32)
    W2 = jax.random.normal(kw2, (O2, I2), dtype=jnp.float32)
    b2 = jax.random.normal(kb2, (O2,), dtype=jnp.float32)

    y2 = jax.block_until_ready(linear_forward(x2, W2, b2, tm=16, tn=256, tk=128))
    y2_ref = x2 @ W2.T + b2
    assert y2.shape == (B2, O2)
    assert jnp.allclose(y2, y2_ref, atol=1e-3, rtol=1e-3)

    print("KERNEL_OK")
</pallas_src>

<mosaic_0001>
module attributes {stable_mosaic.version = 11 : i64} {
  func.func @kernel(%arg0: i32, %arg1: i32, %arg2: i32, %arg3: memref<8x32xf32, #tpu.memory_space<vmem>>, %arg4: memref<256x32xf32, #tpu.memory_space<vmem>>, %arg5: memref<1x256xf32, #tpu.memory_space<vmem>>, %arg6: memref<8x256xf32, #tpu.memory_space<vmem>>, %arg7: memref<8x256xf32, #tpu.memory_space<vmem>>) attributes {dimension_semantics = [#tpu.dimension_semantics<parallel>, #tpu.dimension_semantics<parallel>, #tpu.dimension_semantics<arbitrary>], iteration_bounds = array<i64: 1, 1, 1>, scalar_prefetch = 0 : i64, scratch_operands = 1 : i64, tpu.core_type = #tpu.core_type<tc>, window_params = [{transform_indices = @transform_0, window_bounds = array<i64: 8, 32>}, {transform_indices = @transform_1, window_bounds = array<i64: 256, 32>}, {transform_indices = @transform_2, window_bounds = array<i64: 1, 256>}, {transform_indices = @transform_3, window_bounds = array<i64: 8, 256>}]} {
    %c0_i32 = arith.constant 0 : i32
    %0 = arith.cmpi eq, %arg2, %c0_i32 : i32
    %1 = arith.extui %0 : i1 to i32
    %c0_i32_0 = arith.constant 0 : i32
    %2 = arith.cmpi ne, %1, %c0_i32_0 : i32
    scf.if %2 {
      %cst_10 = arith.constant 0.000000e+00 : f32
      %12 = vector.broadcast %cst_10 : f32 to vector<8x256xf32>
      %c0_11 = arith.constant 0 : index
      %c0_12 = arith.constant 0 : index
      %13 = vector.load %arg7[%c0_11, %c0_12] : memref<8x256xf32, #tpu.memory_space<vmem>>, vector<8x256xf32>
      tpu.vector_store %arg7[%c0_11, %c0_12], %12 {strides = array<i32>} : memref<8x256xf32, #tpu.memory_space<vmem>>, vector<8x256xf32>,
    } else {
    }
    %c0 = arith.constant 0 : index
    %c0_1 = arith.constant 0 : index
    %3 = vector.load %arg3[%c0, %c0_1] : memref<8x32xf32, #tpu.memory_space<vmem>>, vector<8x32xf32>
    %c0_2 = arith.constant 0 : index
    %c0_3 = arith.constant 0 : index
    %4 = vector.load %arg4[%c0_2, %c0_3] : memref<256x32xf32, #tpu.memory_space<vmem>>, vector<256x32xf32>
    %c0_4 = arith.constant 0 : index
    %c0_5 = arith.constant 0 : index
    %5 = vector.load %arg7[%c0_4, %c0_5] : memref<8x256xf32, #tpu.memory_space<vmem>>, vector<8x256xf32>
    %cst = arith.constant dense<0.000000e+00> : vector<8x256xf32>
    %6 = tpu.matmul %3, %4, %cst {dimension_numbers = #tpu.dot_dimension_numbers<[1], [1], [0], [0], [0, 0, 1, 0], [], []>} : vector<8x32xf32>, vector<256x32xf32>, vector<8x256xf32> -> vector<8x256xf32>
    %7 = arith.addf %5, %6 : vector<8x256xf32>
    %c0_6 = arith.constant 0 : index
    %c0_7 = arith.constant 0 : index
    %8 = vector.load %arg7[%c0_6, %c0_7] : memref<8x256xf32, #tpu.memory_space<vmem>>, vector<8x256xf32>
    tpu.vector_store %arg7[%c0_6, %c0_7], %7 {strides = array<i32>} : memref<8x256xf32, #tpu.memory_space<vmem>>, vector<8x256xf32>,
    %c0_i32_8 = arith.constant 0 : i32
    %9 = arith.cmpi eq, %arg2, %c0_i32_8 : i32
    %10 = arith.extui %9 : i1 to i32
    %c0_i32_9 = arith.constant 0 : i32
    %11 = arith.cmpi ne, %10, %c0_i32_9 : i32
    scf.if %11 {
      %c0_10 = arith.constant 0 : index
      %c0_11 = arith.constant 0 : index
      %12 = vector.load %arg7[%c0_10, %c0_11] : memref<8x256xf32, #tpu.memory_space<vmem>>, vector<8x256xf32>
      %c0_12 = arith.constant 0 : index
      %c0_13 = arith.constant 0 : index
      %13 = vector.load %arg5[%c0_12, %c0_13] : memref<1x256xf32, #tpu.memory_space<vmem>>, vector<1x256xf32>
      %14 = vector.broadcast %13 : vector<1x256xf32> to vector<8x256xf32>
      %15 = arith.addf %12, %14 : vector<8x256xf32>
      %c0_14 = arith.constant 0 : index
      %c0_15 = arith.constant 0 : index
      %16 = vector.load %arg6[%c0_14, %c0_15] : memref<8x256xf32, #tpu.memory_space<vmem>>, vector<8x256xf32>
      tpu.vector_store %arg6[%c0_14, %c0_15], %15 {strides = array<i32>} : memref<8x256xf32, #tpu.memory_space<vmem>>, vector<8x256xf32>,
    } else {
    }
    return
  }
  func.func @transform_0(%arg0: i32, %arg1: i32, %arg2: i32) -> (i32, i32) {
    %c0_i32 = arith.constant 0 : i32
    return %arg0, %arg2 : i32, i32
  }
  func.func @transform_1(%arg0: i32, %arg1: i32, %arg2: i32) -> (i32, i32) {
    %c0_i32 = arith.constant 0 : i32
    return %arg1, %arg2 : i32, i32
  }
  func.func @transform_2(%arg0: i32, %arg1: i32, %arg2: i32) -> (i32, i32) {
    %c0_i32 = arith.constant 0 : i32
    %c0_i32_0 = arith.constant 0 : i32
    return %c0_i32, %arg1 : i32, i32
  }
  func.func @transform_3(%arg0: i32, %arg1: i32, %arg2: i32) -> (i32, i32) {
    %c0_i32 = arith.constant 0 : i32
    return %arg0, %arg1 : i32, i32
  }
}

</mosaic_0001>

<bundles_post_ra>
// kernel: tpu_custom_call.1
= control target key start
LH: loop header
LB: loop body
LE: loop exit
PB: predicated region body
PF: predicated region fallthrough
CT: control target
= control target key end

     0   :  { %8 = vsyncpa [#allocation4], 0  ;;  %s590_s0 = inlined_call_operand.hbm [shape: f32[8,32], index: 0, kind: input, shape index: {}]   ;;  %s591_s1 = inlined_call_operand.hbm [shape: f32[16,32], index: 1, kind: input, shape index: {}]   ;;  %s592_s2 = inlined_call_operand.vmem [shape: f32[1,16], index: 2, kind: input, shape index: {}]   ;;  %s593_s3 = inlined_call_operand.hbm [shape: f32[8,16], index: 3, kind: output, shape index: {}]  }
   0x1   :  { %9 = vsyncpa [#allocation7], 0 }
   0x2   :  { %10 = vsyncpa [#allocation5], 0  ;;  %s486_s12 = smov [#allocation3]   ;;  %s414_s16 = scalar_lea.hbm %s590_s0, 128 }
   0x3   :  { %s17_s13 = sshll.u32 %s486_s12, 4  ;;  %p415_p0 = scmp.ne.s32.totalorder %s590_s0, %s414_s16  ;;  %s18_s13 = int_to_ptr.vmem [resolvable:$true] %s17_s13 }
   0x4   :  { %p418_p1 = scmp.lt.u32.totalorder %s414_s16, %s590_s0 }
   0x6   :  { %p420_p2 = pnand %p418_p1, %p415_p0 }
   0x8   :  { %423 = shalt.err (!%p420_p2)
}
   0x9   :  { %s424_s21 = scalar_lea.vmem %s18_s13, 128  ;;  %p429_p4 = scmp.lt.s32.totalorder %s18_s13, %s18_s13 }
   0xa   :  { %p425_p3 = scmp.ne.s32.totalorder %s18_s13, %s424_s21  ;;  %p430_p5 = scmp.lt.s32.totalorder %s424_s21, %s424_s21 }
   0xc   :  { %p431_p6 = por %p430_p5, %p429_p4 }
   0xe   :  { %p432_p7 = pnand %p431_p6, %p425_p3 }
  0x10   :  { %435 = shalt.err (!%p432_p7)
}
  0x11   :  { %20 = dma.hbm_to_vmem [thread:$0]  %s590_s0, 128, %s18_s13, [#allocation4]  }
  0x12   :  { %25 = vsyncadd [#allocation7], 3840  ;;  %s487_s24 = smov [#allocation6]   ;;  %s436_s28 = scalar_lea.hbm %s591_s1, 256 }
  0x13   :  { %s26_s25 = sshll.u32 %s487_s24, 4  ;;  %p437_p8 = scmp.ne.s32.totalorder %s591_s1, %s436_s28  ;;  %s27_s25 = int_to_ptr.vmem [resolvable:$true] %s26_s25 }
  0x14   :  { %p440_p9 = scmp.lt.u32.totalorder %s436_s28, %s591_s1 }
  0x16   :  { %p442_p10 = pnand %p440_p9, %p437_p8 }
  0x18   :  { %445 = shalt.err (!%p442_p10)
}
  0x19   :  { %s446_s6 = scalar_lea.vmem %s27_s25, 256  ;;  %s450_s0 = scalar_lea.vmem %s27_s25, 4096 }
  0x1a   :  { %p447_p11 = scmp.ne.s32.totalorder %s27_s25, %s446_s6  ;;  %p451_p12 = scmp.lt.s32.totalorder %s27_s25, %s27_s25 }
  0x1b   :  { %p452_p13 = scmp.lt.s32.totalorder %s450_s0, %s446_s6 }
  0x1d   :  { %p453_p0 = por %p452_p13, %p451_p12 }
  0x1f   :  { %p454_p1 = pnand %p453_p0, %p447_p11 }
  0x21   :  { %457 = shalt.err (!%p454_p1)
}
  0x22   :  { %s488_s7 = smov 128   ;;  %s489_s8 = smov 8  }
  0x23   :  { %32 = dma.hbm_to_vmem [thread:$0]  %s591_s1, 256, %s27_s25, [#allocation7], %s488_s7, %s488_s7, %s489_s8  }
  0x24   :  { %480 = dma.done.wait [#allocation4], 128  }
  0x25   :  { %481 = vsyncadd [#allocation4], 4294967168 }
  0x26   :  { %482 = dma.done.wait [#allocation7], 4096  }
  0x27   :  { %483 = vsyncadd [#allocation7], 4294963200  ;;  %vm82_vm0 = vcmask 261120   ;;  %v64_v1 = vld [vmem:[#allocation6 + $0x80] sm:$0xff]  ;;  %v65_v2 = vld [vmem:[#allocation6 + $0x88] sm:$0xff]  ;;  %v264_v50 = vlaneseq }
  0x28   :  { %vm537_vm1 = vmpackc.low %vm82_vm0, %vm82_vm0  ;;  %v48_v3 = vld [vmem:[#allocation6] sm:$0xff]  ;;  %v361_v4 = vpack.c.bf16 %v65_v2, %v64_v1  ;;  %v49_v5 = vld [vmem:[#allocation6 + $0x8] sm:$0xff] }
  0x29   :  { %v66_v6 = vld [vmem:[#allocation6 + $0x90] sm:$0xff]  ;;  %v67_v7 = vld [vmem:[#allocation6 + $0x98] sm:$0xff]  ;;  %v364_v8 = vpack.c.bf16 %v49_v5, %v48_v3  ;;  %v68_v12 = vld [vmem:[#allocation6 + $0xa0] sm:$0xff]  ;;  %v265_v51 = vshrl.u32 %v264_v50, 7 }
  0x2a   :  { %v367_v9 = vpack.c.bf16 %v67_v7, %v66_v6  ;;  %363 = vmatprep.subr.msk.bf16.mxu0 %vm537_vm1, %v361_v4  ;;  %v50_v10 = vld [vmem:[#allocation6 + $0x10] sm:$0xff]  ;;  %v51_v11 = vld [vmem:[#allocation6 + $0x18] sm:$0xff]  ;;  %v69_v13 = vld [vmem:[#allocation6 + $0xa8] sm:$0xff] }
  0x2b   :  { %366 = vmatpush3.bf16.xpose.msk.msra.mxu0 %vm537_vm1, %v364_v8  ;;  %v370_v14 = vpack.c.bf16 %v51_v11, %v50_v10  ;;  %v373_v15 = vpack.c.bf16 %v69_v13, %v68_v12  ;;  %v47_v16 = vld [vmem:[#allocation3] sm:$0xff]  ;;  %v52_v17 = vld [vmem:[#allocation6 + $0x20] sm:$0xff]  ;;  %v53_v18 = vld [vmem:[#allocation6 + $0x28] sm:$0xff]  ;;  %v266_v52 = vsub.s32 0, %v265_v51  ;;  %v270_v54 = vsub.s32 1, %v265_v51 }
  0x2c   :  { %369 = vmatprep.subr.msk.bf16.mxu0 %vm537_vm1, %v367_v9  ;;  %359 = vmatprep.mubr.msk.f32.mxu0 %vm82_vm0, %v47_v16  ;;  %v70_v19 = vld [vmem:[#allocation6 + $0xb0] sm:$0xff]  ;;  %v71_v20 = vld [vmem:[#allocation6 + $0xb8] sm:$0xff]  ;;  %v376_v21 = vpack.c.bf16 %v53_v18, %v52_v17  ;;  %v72_v25 = vld [vmem:[#allocation6 + $0xc0] sm:$0xff] }
  0x2d   :  { %v379_v22 = vpack.c.bf16 %v71_v20, %v70_v19  ;;  %v54_v23 = vld [vmem:[#allocation6 + $0x30] sm:$0xff]  ;;  %v55_v24 = vld [vmem:[#allocation6 + $0x38] sm:$0xff]  ;;  %v73_v26 = vld [vmem:[#allocation6 + $0xc8] sm:$0xff] }
  0x2e   :  { %v382_v27 = vpack.c.bf16 %v55_v24, %v54_v23  ;;  %v385_v28 = vpack.c.bf16 %v73_v26, %v72_v25  ;;  %v56_v29 = vld [vmem:[#allocation6 + $0x40] sm:$0xff]  ;;  %v57_v30 = vld [vmem:[#allocation6 + $0x48] sm:$0xff]  ;;  %v74_v31 = vld [vmem:[#allocation6 + $0xd0] sm:$0xff] }
  0x2f   :  { %v75_v32 = vld [vmem:[#allocation6 + $0xd8] sm:$0xff]  ;;  %v388_v33 = vpack.c.bf16 %v57_v30, %v56_v29  ;;  %v58_v35 = vld [vmem:[#allocation6 + $0x50] sm:$0xff]  ;;  %v76_v37 = vld [vmem:[#allocation6 + $0xe0] sm:$0xff] }
  0x30   :  { %v391_v34 = vpack.c.bf16 %v75_v32, %v74_v31  ;;  %v59_v36 = vld [vmem:[#allocation6 + $0x58] sm:$0xff]  ;;  %v77_v38 = vld [vmem:[#allocation6 + $0xe8] sm:$0xff]  ;;  %v60_v41 = vld [vmem:[#allocation6 + $0x60] sm:$0xff] }
  0x31   :  { %v394_v39 = vpack.c.bf16 %v59_v36, %v58_v35  ;;  %v397_v40 = vpack.c.bf16 %v77_v38, %v76_v37  ;;  %v61_v42 = vld [vmem:[#allocation6 + $0x68] sm:$0xff]  ;;  %v78_v43 = vld [vmem:[#allocation6 + $0xf0] sm:$0xff]  ;;  %v79_v44 = vld [vmem:[#allocation6 + $0xf8] sm:$0xff] }
  0x32   :  { %v400_v45 = vpack.c.bf16 %v61_v42, %v60_v41  ;;  %v403_v46 = vpack.c.bf16 %v79_v44, %v78_v43  ;;  %v62_v47 = vld [vmem:[#allocation6 + $0x70] sm:$0xff]  ;;  %v63_v48 = vld [vmem:[#allocation6 + $0x78] sm:$0xff] }
  0x33   :  { %372 = vmatpush3.bf16.xpose.msk.msra.mxu0 %vm537_vm1, %v370_v14  ;;  %v406_v49 = vpack.c.bf16 %v63_v48, %v62_v47  ;;  %v262_v53 = vld [vmem:[%s592_s2] sm:$0x3] }
  0x34   :  { %375 = vmatprep.subr.msk.bf16.mxu0 %vm537_vm1, %v373_v15  ;;  %v267_v55 = vrot.slane %v262_v53, %v266_v52  ;;  %v271_v56 = vrot.slane %v262_v53, %v270_v54 }
  0x3b   :  { %378 = vmatpush3.bf16.xpose.msk.msra.mxu0 %vm537_vm1, %v376_v21 }
  0x3c   :  { %381 = vmatprep.subr.msk.bf16.mxu0 %vm537_vm1, %v379_v22 }
  0x43   :  { %384 = vmatpush3.bf16.xpose.msk.msra.mxu0 %vm537_vm1, %v382_v27 }
  0x44   :  { %387 = vmatprep.subr.msk.bf16.mxu0 %vm537_vm1, %v385_v28 }
  0x4b   :  { %390 = vmatpush3.bf16.xpose.msk.msra.mxu0 %vm537_vm1, %v388_v33 }
  0x4c   :  { %393 = vmatprep.subr.msk.bf16.mxu0 %vm537_vm1, %v391_v34 }
  0x53   :  { %396 = vmatpush3.bf16.xpose.msk.msra.mxu0 %vm537_vm1, %v394_v39 }
  0x54   :  { %399 = vmatprep.subr.msk.bf16.mxu0 %vm537_vm1, %v397_v40 }
  0x5b   :  { %402 = vmatpush3.bf16.xpose.msk.msra.mxu0 %vm537_vm1, %v400_v45 }
  0x5c   :  { %405 = vmatprep.subr.msk.bf16.mxu0 %vm537_vm1, %v403_v46 }
  0x63   :  { %408 = vmatpush3.bf16.xpose.msk.msra.mxu0 %vm537_vm1, %v406_v49 }
  0x6a   :  { %360 = vmatmul.mubr.msk.f32.vlgmr.msra.gmra.mrb[0].mxu0 %vm82_vm0, %v47_v16 }
 0x13d   :  { %v248_v57 = vpop.f32.mrb[0].mxu0 }
 0x13e   :  { %v274_v58 = vadd.f32 %v267_v55, %v248_v57  ;;  %v250_v59 = vpop.f32.mrb[1].mxu0 }
 0x13f   :  { %v275_v60 = vadd.f32 %v271_v56, %v250_v59 }
 0x140   :  { %276 = vst [vmem:[#allocation8] sm:$0xff] %v274_v58 }
 0x141   :  { %277 = vst [vmem:[#allocation8 + $0x8] sm:$0xff] %v275_v60 }
 0x142   :  { %282 = vsyncadd [#allocation5], 128  ;;  %s490_s12 = smov [#allocation8]  }
 0x143   :  { %s284_s13 = sshll.u32 %s490_s12, 4  ;;  %s285_s13 = int_to_ptr.vmem [resolvable:$true] %s284_s13 }
 0x144   :  { %s458_s14 = scalar_lea.vmem %s285_s13, 128  ;;  %s462_s15 = scalar_lea.vmem %s285_s13, 256 }
 0x145   :  { %p459_p2 = scmp.ne.s32.totalorder %s285_s13, %s458_s14  ;;  %p463_p3 = scmp.lt.s32.totalorder %s285_s13, %s285_s13 }
 0x146   :  { %p464_p4 = scmp.lt.s32.totalorder %s462_s15, %s458_s14 }
 0x148   :  { %p465_p5 = por %p464_p4, %p463_p3 }
 0x14a   :  { %p466_p6 = pnand %p465_p5, %p459_p2 }
 0x14c   :  { %469 = shalt.err (!%p466_p6)
}
 0x14d   :  { %s470_s17 = scalar_lea.hbm %s593_s3, 128 }
 0x14e   :  { %p471_p7 = scmp.ne.s32.totalorder %s593_s3, %s470_s17  ;;  %p474_p8 = scmp.lt.u32.totalorder %s470_s17, %s593_s3 }
 0x150   :  { %p476_p9 = pnand %p474_p8, %p471_p7 }
 0x152   :  { %479 = shalt.err (!%p476_p9)
}
 0x153   :  { %287 = dma.vmem_to_hbm [thread:$0]  %s285_s13, 128, %s593_s3, [#allocation5]  }
 0x154   :  { %484 = dma.done.wait [#allocation5], 256  }
 0x155   :  { %485 = vsyncadd [#allocation5], 4294967040 }
 0x156   :  { %291 = vsyncpa [#allocation4], 1 }
 0x157   :  { %292 = vsyncpa [#allocation7], 1 }
 0x158   :  { %293 = vsyncpa [#allocation5], 1 }

</bundles_post_ra>
